<compile_context>
chip_gen: v5e
topology: v5e:2x2
jax: 0.10.0
libtpu: 0.0.40
codegen_flags: <defaults>
</compile_context>

<pallas_src>
import jax
import jax.numpy as jnp
from jax.experimental import pallas as pl
from jax.experimental.pallas import tpu as pltpu


def _round_up(x, m):
    return pl.cdiv(x, m) * m


def recsys_kernel(x_ref,                      # (TB, UD+CD) f32 batch tile
                  w_emb_ref, b_emb_ref,       # (UD+CD, 2H) bf16 block-diag, (1, 2H) f32
                  w1_ref, b1_ref,             # (2H, 32) bf16, (1, 32) f32
                  w2_ref, b2_ref,             # (1, 32) f32 row, (1, 1) f32
                  out_ref):                   # (1, TB) f32, lane-dense
    # Cast the f32 tile to bf16 on the VPU (free), fused embedding matmul on
    # the MXU with f32 accumulation.  Block-diagonal weight => the result is
    # exactly [user_emb | course_emb] in torch's concat order.
    x = x_ref[...].astype(jnp.bfloat16)                       # (TB, UD+CD)
    emb = jnp.dot(x, w_emb_ref[...],
                  preferred_element_type=jnp.float32) + b_emb_ref[...]
    emb = jnp.maximum(emb, 0.0).astype(jnp.bfloat16)          # (TB, 2H) ReLU

    # Hidden Linear(2H, 32): single MXU pass on the contiguous activation.
    h1 = jnp.dot(emb, w1_ref[...],
                 preferred_element_type=jnp.float32) + b1_ref[...]
    h1 = jnp.maximum(h1, 0.0)                                  # (TB, 32) f32

    # Final Linear(32, 1): VPU broadcast-multiply + lane reduce (no N=1 MXU
    # pass), stored as one lane-dense (1, TB) row of probabilities.
    logits = jnp.sum(h1 * w2_ref[...], axis=1)                 # (TB,)
    out_ref[...] = jax.nn.sigmoid(logits[None, :] + b2_ref[...])


def recsys_forward(user_vec, course_vec, params, *, block_rows=8192):
    """user_vec: (B, UD) f32, course_vec: (B, CD) f32 -> probabilities (B, 1) f32."""
    assert block_rows % 128 == 0
    B, UD = user_vec.shape
    _, CD = course_vec.shape
    D = UD + CD

    # Batch tile: multiple of 128 (lane-dense output slab, bf16 sublane packing).
    TB = int(min(block_rows, _round_up(B, 128)))
    # Keep at least 2 grid tiles when the batch allows it so both v7x
    # TensorCores get work under dimension_semantics=("parallel",).
    if B > 128 and _round_up(B, TB) // TB < 2:
        TB = int(max(128, _round_up(pl.cdiv(B, 2), 128)))
    B_pad = int(_round_up(B, TB))
    n_tiles = B_pad // TB

    # Single concat pass (f32 stays on the DMA path; bf16 cast happens in-kernel).
    x = jnp.concatenate([user_vec, course_vec], axis=1)        # (B, D) f32
    if B_pad != B:
        x = jnp.pad(x, ((0, B_pad - B), (0, 0)))

    args = (x,
            params["w_emb"], params["b_emb"],
            params["w1"], params["b1"],
            params["w2_row"], params["b2"])

    def resident_spec(arr):
        # Full-array block, constant index_map -> stays VMEM-resident across tiles.
        return pl.BlockSpec(arr.shape, lambda i: (0, 0))

    in_specs = [
        pl.BlockSpec((TB, D), lambda i: (i, 0)),   # batch tile (pipelined)
        resident_spec(params["w_emb"]),
        resident_spec(params["b_emb"]),
        resident_spec(params["w1"]),
        resident_spec(params["b1"]),
        resident_spec(params["w2_row"]),
        resident_spec(params["b2"]),
    ]

    out = pl.pallas_call(
        recsys_kernel,
        out_shape=jax.ShapeDtypeStruct((1, B_pad), jnp.float32),
        grid=(n_tiles,),
        in_specs=in_specs,
        out_specs=pl.BlockSpec((1, TB), lambda i: (0, i)),
        compiler_params=pltpu.CompilerParams(
            dimension_semantics=("parallel",),
            vmem_limit_bytes=32 * 1024 * 1024,
        ),
    )(*args)

    return out.reshape(-1)[:B].reshape(B, 1)


def init_params(key, user_dim, course_dim, hidden_dim=64):
    """Deterministic synthetic parameters, stored as [in, out] (pre-transposed
    relative to torch nn.Linear's [out, in]) in f32."""
    ks = jax.random.split(key, 8)

    def lin(kw, kb, din, dout):
        bound = 1.0 / jnp.sqrt(jnp.float32(din))
        w = jax.random.uniform(kw, (din, dout), jnp.float32, -bound, bound)
        b = jax.random.uniform(kb, (1, dout), jnp.float32, -bound, bound)
        return w, b

    wu, bu = lin(ks[0], ks[1], user_dim, hidden_dim)
    wc, bc = lin(ks[2], ks[3], course_dim, hidden_dim)
    w1, b1 = lin(ks[4], ks[5], hidden_dim * 2, 32)
    w2, b2 = lin(ks[6], ks[7], 32, 1)
    return {"wu": wu, "bu": bu, "wc": wc, "bc": bc,
            "w1": w1, "b1": b1, "w2": w2, "b2": b2}


def prepare_params(p, user_dim, course_dim, hidden_dim):
    """Kernel-ready params:
      * block-diagonal fused embedding weight (UD+CD, 2H) bf16 — zero blocks are
        exactly zero, column order matches torch cat([user_emb, course_emb]);
      * concatenated (1, 2H) f32 embedding bias in the same order;
      * single (2H, 32) bf16 hidden weight;
      * final layer as a (1, 32) f32 row vector for the VPU reduce."""
    UD, CD, H = user_dim, course_dim, hidden_dim
    w_emb = jnp.zeros((UD + CD, 2 * H), jnp.float32)
    w_emb = w_emb.at[:UD, :H].set(p["wu"])
    w_emb = w_emb.at[UD:, H:].set(p["wc"])
    b_emb = jnp.concatenate([p["bu"], p["bc"]], axis=1)   # (1, 2H) f32
    return {
        "w_emb": w_emb.astype(jnp.bfloat16),
        "b_emb": b_emb,
        "w1": p["w1"].astype(jnp.bfloat16),                # (2H, 32)
        "b1": p["b1"],
        "w2_row": p["w2"].T,                               # (1, 32) f32
        "b2": p["b2"],                                     # (1, 1)  f32
    }


def reference_forward(user_vec, course_vec, p):
    """Pure-JAX reference following the torch module, on the same bf16 matmul
    path as the kernel (bf16 operands, f32 accumulation, f32 epilogue)."""
    f32 = jnp.float32
    u = user_vec.astype(jnp.bfloat16).astype(f32)
    c = course_vec.astype(jnp.bfloat16).astype(f32)
    wu = p["wu"].astype(jnp.bfloat16).astype(f32)
    wc = p["wc"].astype(jnp.bfloat16).astype(f32)
    w1 = p["w1"].astype(jnp.bfloat16).astype(f32)

    ue = u @ wu + p["bu"]
    ce = c @ wc + p["bc"]
    x = jnp.concatenate([ue, ce], axis=1)
    x = jnp.maximum(x, 0.0).astype(jnp.bfloat16).astype(f32)
    x = jnp.maximum(x @ w1 + p["b1"], 0.0)
    return jax.nn.sigmoid(x @ p["w2"] + p["b2"])


if __name__ == "__main__":
    key = jax.random.PRNGKey(0)
    k_u, k_c, k_p = jax.random.split(key, 3)

    B, USER_DIM, COURSE_DIM, HIDDEN = 8, 16, 24, 64

    user_vec = jax.random.normal(k_u, (B, USER_DIM), jnp.float32)
    course_vec = jax.random.normal(k_c, (B, COURSE_DIM), jnp.float32)

    raw_params = init_params(k_p, USER_DIM, COURSE_DIM, HIDDEN)
    params = prepare_params(raw_params, USER_DIM, COURSE_DIM, HIDDEN)

    out = recsys_forward(user_vec, course_vec, params)
    out = jax.block_until_ready(out)

    ref = reference_forward(user_vec, course_vec, raw_params)
    assert out.shape == (B, 1), out.shape
    max_err = float(jnp.max(jnp.abs(out - ref)))
    assert jnp.allclose(out, ref, atol=2e-3, rtol=0.0), max_err

    print("KERNEL_OK")
</pallas_src>

<mosaic_0001>
module attributes {stable_mosaic.version = 11 : i64} {
  func.func @recsys_kernel(%arg0: i32, %arg1: memref<128x40xf32, #tpu.memory_space<vmem>>, %arg2: memref<40x128xbf16, #tpu.memory_space<vmem>>, %arg3: memref<1x128xf32, #tpu.memory_space<vmem>>, %arg4: memref<128x32xbf16, #tpu.memory_space<vmem>>, %arg5: memref<1x32xf32, #tpu.memory_space<vmem>>, %arg6: memref<1x32xf32, #tpu.memory_space<vmem>>, %arg7: memref<1x1xf32, #tpu.memory_space<vmem>>, %arg8: memref<1x128xf32, #tpu.memory_space<vmem>>) attributes {dimension_semantics = [#tpu.dimension_semantics<parallel>], iteration_bounds = array<i64: 1>, scalar_prefetch = 0 : i64, scratch_operands = 0 : i64, tpu.core_type = #tpu.core_type<tc>, window_params = [{transform_indices = @transform_0, window_bounds = array<i64: 128, 40>}, {pipeline_mode = #tpu.pipeline_mode<synchronous>, transform_indices = @transform_1, window_bounds = array<i64: 40, 128>}, {pipeline_mode = #tpu.pipeline_mode<synchronous>, transform_indices = @transform_2, window_bounds = array<i64: 1, 128>}, {pipeline_mode = #tpu.pipeline_mode<synchronous>, transform_indices = @transform_3, window_bounds = array<i64: 128, 32>}, {pipeline_mode = #tpu.pipeline_mode<synchronous>, transform_indices = @transform_4, window_bounds = array<i64: 1, 32>}, {pipeline_mode = #tpu.pipeline_mode<synchronous>, transform_indices = @transform_5, window_bounds = array<i64: 1, 32>}, {pipeline_mode = #tpu.pipeline_mode<synchronous>, transform_indices = @transform_6, window_bounds = array<i64: 1, 1>}, {transform_indices = @transform_7, window_bounds = array<i64: 1, 128>}]} {
    %c0 = arith.constant 0 : index
    %c0_0 = arith.constant 0 : index
    %0 = vector.load %arg1[%c0, %c0_0] : memref<128x40xf32, #tpu.memory_space<vmem>>, vector<128x40xf32>
    %1 = arith.truncf %0 : vector<128x40xf32> to vector<128x40xbf16>
    %c0_1 = arith.constant 0 : index
    %c0_2 = arith.constant 0 : index
    %2 = vector.load %arg2[%c0_1, %c0_2] : memref<40x128xbf16, #tpu.memory_space<vmem>>, vector<40x128xbf16>
    %cst = arith.constant dense<0.000000e+00> : vector<128x128xf32>
    %3 = tpu.matmul %1, %2, %cst {dimension_numbers = #tpu.dot_dimension_numbers<[1], [0], [0], [1], [0, 0, 1, 1], [], []>} : vector<128x40xbf16>, vector<40x128xbf16>, vector<128x128xf32> -> vector<128x128xf32>
    %c0_3 = arith.constant 0 : index
    %c0_4 = arith.constant 0 : index
    %4 = vector.load %arg3[%c0_3, %c0_4] : memref<1x128xf32, #tpu.memory_space<vmem>>, vector<1x128xf32>
    %5 = vector.broadcast %4 : vector<1x128xf32> to vector<128x128xf32>
    %6 = arith.addf %3, %5 : vector<128x128xf32>
    %cst_5 = arith.constant 0.000000e+00 : f32
    %7 = vector.broadcast %cst_5 : f32 to vector<128x128xf32>
    %8 = arith.maximumf %6, %7 : vector<128x128xf32>
    %9 = arith.truncf %8 : vector<128x128xf32> to vector<128x128xbf16>
    %c0_6 = arith.constant 0 : index
    %c0_7 = arith.constant 0 : index
    %10 = vector.load %arg4[%c0_6, %c0_7] : memref<128x32xbf16, #tpu.memory_space<vmem>>, vector<128x32xbf16>
    %cst_8 = arith.constant dense<0.000000e+00> : vector<128x32xf32>
    %11 = tpu.matmul %9, %10, %cst_8 {dimension_numbers = #tpu.dot_dimension_numbers<[1], [0], [0], [1], [0, 0, 1, 1], [], []>} : vector<128x128xbf16>, vector<128x32xbf16>, vector<128x32xf32> -> vector<128x32xf32>
    %c0_9 = arith.constant 0 : index
    %c0_10 = arith.constant 0 : index
    %12 = vector.load %arg5[%c0_9, %c0_10] : memref<1x32xf32, #tpu.memory_space<vmem>>, vector<1x32xf32>
    %13 = vector.broadcast %12 : vector<1x32xf32> to vector<128x32xf32>
    %14 = arith.addf %11, %13 : vector<128x32xf32>
    %cst_11 = arith.constant 0.000000e+00 : f32
    %15 = vector.broadcast %cst_11 : f32 to vector<128x32xf32>
    %16 = arith.maximumf %14, %15 : vector<128x32xf32>
    %c0_12 = arith.constant 0 : index
    %c0_13 = arith.constant 0 : index
    %17 = vector.load %arg6[%c0_12, %c0_13] : memref<1x32xf32, #tpu.memory_space<vmem>>, vector<1x32xf32>
    %18 = vector.broadcast %17 : vector<1x32xf32> to vector<128x32xf32>
    %19 = arith.mulf %16, %18 : vector<128x32xf32>
    %cst_14 = arith.constant dense<0.000000e+00> : vector<128xf32>
    %20 = vector.multi_reduction <add>, %19, %cst_14 [1] : vector<128x32xf32> to vector<128xf32>
    %21 = vector.shape_cast %20 : vector<128xf32> to vector<1x128xf32>
    %c0_15 = arith.constant 0 : index
    %c0_16 = arith.constant 0 : index
    %22 = vector.load %arg7[%c0_15, %c0_16] : memref<1x1xf32, #tpu.memory_space<vmem>>, vector<1x1xf32>
    %23 = vector.broadcast %22 : vector<1x1xf32> to vector<1x128xf32>
    %24 = arith.addf %21, %23 : vector<1x128xf32>
    %25 = arith.negf %24 : vector<1x128xf32>
    %26 = math.exp %25 : vector<1x128xf32>
    %cst_17 = arith.constant 1.000000e+00 : f32
    %27 = vector.broadcast %cst_17 : f32 to vector<1x128xf32>
    %28 = arith.addf %27, %26 : vector<1x128xf32>
    %29 = arith.divf %27, %28 : vector<1x128xf32>
    %c0_18 = arith.constant 0 : index
    %c0_19 = arith.constant 0 : index
    %30 = vector.load %arg8[%c0_18, %c0_19] : memref<1x128xf32, #tpu.memory_space<vmem>>, vector<1x128xf32>
    tpu.vector_store %arg8[%c0_18, %c0_19], %29 {strides = array<i32>} : memref<1x128xf32, #tpu.memory_space<vmem>>, vector<1x128xf32>,
    return
  }
  func.func @transform_0(%arg0: i32) -> (i32, i32) {
    %c0_i32 = arith.constant 0 : i32
    %c0_i32_0 = arith.constant 0 : i32
    return %arg0, %c0_i32 : i32, i32
  }
  func.func @transform_1(%arg0: i32) -> (i32, i32) {
    %c0_i32 = arith.constant 0 : i32
    %c0_i32_0 = arith.constant 0 : i32
    %c0_i32_1 = arith.constant 0 : i32
    return %c0_i32, %c0_i32_0 : i32, i32
  }
  func.func @transform_2(%arg0: i32) -> (i32, i32) {
    %c0_i32 = arith.constant 0 : i32
    %c0_i32_0 = arith.constant 0 : i32
    %c0_i32_1 = arith.constant 0 : i32
    return %c0_i32, %c0_i32_0 : i32, i32
  }
  func.func @transform_3(%arg0: i32) -> (i32, i32) {
    %c0_i32 = arith.constant 0 : i32
    %c0_i32_0 = arith.constant 0 : i32
    %c0_i32_1 = arith.constant 0 : i32
    return %c0_i32, %c0_i32_0 : i32, i32
  }
  func.func @transform_4(%arg0: i32) -> (i32, i32) {
    %c0_i32 = arith.constant 0 : i32
    %c0_i32_0 = arith.constant 0 : i32
    %c0_i32_1 = arith.constant 0 : i32
    return %c0_i32, %c0_i32_0 : i32, i32
  }
  func.func @transform_5(%arg0: i32) -> (i32, i32) {
    %c0_i32 = arith.constant 0 : i32
    %c0_i32_0 = arith.constant 0 : i32
    %c0_i32_1 = arith.constant 0 : i32
    return %c0_i32, %c0_i32_0 : i32, i32
  }
  func.func @transform_6(%arg0: i32) -> (i32, i32) {
    %c0_i32 = arith.constant 0 : i32
    %c0_i32_0 = arith.constant 0 : i32
    %c0_i32_1 = arith.constant 0 : i32
    return %c0_i32, %c0_i32_0 : i32, i32
  }
  func.func @transform_7(%arg0: i32) -> (i32, i32) {
    %c0_i32 = arith.constant 0 : i32
    %c0_i32_0 = arith.constant 0 : i32
    return %c0_i32, %arg0 : i32, i32
  }
}

</mosaic_0001>

<bundles_post_ra>
// kernel: tpu_custom_call.1
= control target key start
LH: loop header
LB: loop body
LE: loop exit
PB: predicated region body
PF: predicated region fallthrough
CT: control target
= control target key end

     0   :  { %s1644_s0 = inlined_call_operand.vmem [shape: f32[128,40], index: 0, kind: input, shape index: {}]   ;;  %s1645_s1 = inlined_call_operand.vmem [shape: bf16[40,128], index: 1, kind: input, shape index: {}]   ;;  %s1646_s2 = inlined_call_operand.vmem [shape: f32[1,128], index: 2, kind: input, shape index: {}]   ;;  %s1647_s3 = inlined_call_operand.vmem [shape: bf16[128,32], index: 3, kind: input, shape index: {}]   ;;  %s1648_s4 = inlined_call_operand.vmem [shape: f32[1,32], index: 4, kind: input, shape index: {}]   ;;  %s1649_s5 = inlined_call_operand.vmem [shape: f32[1,32], index: 5, kind: input, shape index: {}]   ;;  %s1650_s6 = inlined_call_operand.<no memory space> [shape: f32[1,1], index: 6, kind: input, shape index: {}]   ;;  %s1651_s7 = inlined_call_operand.hbm [shape: f32[1,128], index: 7, kind: output, shape index: {}]  }
   0x1   :  { %v12_v0 = vstv %s1650_s6 }
   0x2   :  { %13 = vst [vmem:[#allocation2] sm:$0x1] %v12_v0 }
   0x3   :  { %v58_v1 = vld [vmem:[%s1645_s1 + $0x10] sm:$0xf]  ;;  %vm103_vm0 = vcmask 1043456  }
   0x4   :  { %v72_v2 = vunpack.c.l.b16 %v58_v1 }
   0x6   :  { %v75_v3 = vpack.c.b16 %v72_v2, %v72_v2 }
   0x7   :  { %14 = vsyncpa [#allocation4], 0  ;;  %v871_v5 = vld [vmem:[%s1645_s1 + $0x8] sm:$0xff]  ;;  %v870_v6 = vld [vmem:[%s1645_s1] sm:$0xff]  ;;  %vm78_vm1 = vcmask 326656   ;;  %vm333_vm2 = vcmask 261120  }
   0x8   :  { %v105_v4 = vsel %vm103_vm0, %v75_v3, 0  ;;  %v30_v7 = vld [vmem:[%s1644_s0] sm:$0xff]  ;;  %v31_v8 = vld [vmem:[%s1644_s0 + $0x8] sm:$0xff]  ;;  %v32_v10 = vld [vmem:[%s1644_s0 + $0x10] sm:$0xff]  ;;  %vm730_vm9 = vcmask 130112   ;;  %vm734_vm15 = vcmask 195712  }
   0x9   :  { %112 = vmatpush.bf16.msra.mxu0 %v105_v4  ;;  %880 = vmatpush.bf16.msra.mxu3 %v105_v4  ;;  %v46_v9 = vpack.c.bf16 %v31_v8, %v30_v7  ;;  %v33_v11 = vld [vmem:[%s1644_s0 + $0x18] sm:$0xff]  ;;  %v34_v13 = vld [vmem:[%s1644_s0 + $0x20] sm:$0xff]  ;;  %v35_v14 = vld [vmem:[%s1644_s0 + $0x28] sm:$0xff]  ;;  %v987_v7 = vmov 0   ;;  %s797_s11 = sshll.u32 %s1651_s7, 4  ;;  %s798_s11 = int_to_ptr.hbm [resolvable:$true] %s797_s11 }
   0xa   :  { %v47_v12 = vpack.c.bf16 %v33_v11, %v32_v10  ;;  %v48_v15 = vpack.c.bf16 %v35_v14, %v34_v13  ;;  %v40_v16 = vld [vmem:[%s1644_s0 + $0x50] sm:$0xff]  ;;  %v41_v17 = vld [vmem:[%s1644_s0 + $0x58] sm:$0xff]  ;;  %v877_v21 = vld [vmem:[%s1647_s3 + $0x28] sm:$0xff]  ;;  %893 = vset.pattern.permute.xlu0 %v987_v7 }
   0xb   :  { %v51_v18 = vpack.c.bf16 %v41_v17, %v40_v16  ;;  %v879_v19 = vld [vmem:[%s1647_s3 + $0x38] sm:$0xff]  ;;  %v878_v20 = vld [vmem:[%s1647_s3 + $0x30] sm:$0xff]  ;;  %v42_v24 = vld [vmem:[%s1644_s0 + $0x60] sm:$0xff] }
   0xc   :  { %248 = vmatpush.bf16.msra.mxu1 %v879_v19  ;;  %883 = vmatpush.bf16.msra.mxu2 %v879_v19  ;;  %v36_v22 = vld [vmem:[%s1644_s0 + $0x30] sm:$0xff]  ;;  %v37_v23 = vld [vmem:[%s1644_s0 + $0x38] sm:$0xff]  ;;  %v43_v25 = vld [vmem:[%s1644_s0 + $0x68] sm:$0xff] }
   0xd   :  { %113 = vmatpush.bf16.msra.mxu0 %v871_v5  ;;  %881 = vmatpush.bf16.msra.mxu3 %v871_v5  ;;  %v49_v26 = vpack.c.bf16 %v37_v23, %v36_v22  ;;  %v876_v27 = vld [vmem:[%s1647_s3 + $0x20] sm:$0xff]  ;;  %v52_v28 = vpack.c.bf16 %v43_v25, %v42_v24  ;;  %v39_v30 = vld [vmem:[%s1644_s0 + $0x48] sm:$0xff]  ;;  %v44_v31 = vld [vmem:[%s1644_s0 + $0x70] sm:$0xff] }
   0xe   :  { %v38_v29 = vld [vmem:[%s1644_s0 + $0x40] sm:$0xff]  ;;  %v45_v32 = vld [vmem:[%s1644_s0 + $0x78] sm:$0xff]  ;;  %v874_v36 = vld [vmem:[%s1647_s3 + $0x10] sm:$0xff] }
   0xf   :  { %v50_v33 = vpack.c.bf16 %v39_v30, %v38_v29  ;;  %v53_v34 = vpack.c.bf16 %v45_v32, %v44_v31  ;;  %v875_v35 = vld [vmem:[%s1647_s3 + $0x18] sm:$0xff]  ;;  %v873_v37 = vld [vmem:[%s1647_s3 + $0x8] sm:$0xff]  ;;  %v872_v38 = vld [vmem:[%s1647_s3] sm:$0xff] }
  0x10   :  { %249 = vmatpush.bf16.msra.mxu1 %v878_v20  ;;  %884 = vmatpush.bf16.msra.mxu2 %v878_v20  ;;  %v1124_v40 = vld [vmem:[%s1646_s2] ss:$0 sm:$0xff] }
  0x11   :  { %114 = vmatpush.bf16.msra.mxu0 %v870_v6  ;;  %882 = vmatpush.bf16.msra.mxu3 %v870_v6  ;;  %v382_v4 = vld [vmem:[#allocation2] sm:$0x1] }
  0x12   :  { %385 = vperm.xlu0 %893, %v382_v4  }
  0x14   :  { %814 = vmatmul.msk.bf16.vlgmr.msra.gmra.mxu0 %vm78_vm1, %v46_v9  ;;  %819 = vmatmul.msk.bf16.vlgmr.msra.gmra.mxu3 %vm78_vm1, %v51_v18 }
  0x15   :  { %250 = vmatpush.bf16.msra.mxu1 %v877_v21  ;;  %885 = vmatpush.bf16.msra.mxu2 %v877_v21 }
  0x19   :  { %251 = vmatpush.bf16.msra.mxu1 %v876_v27  ;;  %886 = vmatpush.bf16.msra.mxu2 %v876_v27 }
  0x1d   :  { %252 = vmatpush.bf16.msra.mxu1 %v875_v35  ;;  %887 = vmatpush.bf16.msra.mxu2 %v875_v35 }
  0x21   :  { %253 = vmatpush.bf16.msra.mxu1 %v874_v36  ;;  %888 = vmatpush.bf16.msra.mxu2 %v874_v36 }
  0x24   :  { %815 = vmatmul.msk.bf16.gmra.mxu0 %vm78_vm1, %v47_v12  ;;  %820 = vmatmul.msk.bf16.gmra.mxu3 %vm78_vm1, %v52_v28 }
  0x25   :  { %254 = vmatpush.bf16.msra.mxu1 %v873_v37  ;;  %889 = vmatpush.bf16.msra.mxu2 %v873_v37  ;;  %v1151_v37 = vld [vmem:[%s1649_s5] ss:$0 sm:$0xff] }
  0x29   :  { %255 = vmatpush.bf16.msra.mxu1 %v872_v38  ;;  %890 = vmatpush.bf16.msra.mxu2 %v872_v38 }
  0x34   :  { %816 = vmatmul.msk.bf16.gmra.mxu0 %vm78_vm1, %v48_v15  ;;  %821 = vmatmul.msk.bf16.gmra.mxu3 %vm78_vm1, %v53_v34  ;;  %v1145_v34 = vld [vmem:[%s1648_s4] ss:$0 sm:$0xff]  ;;  %s988_s4 = smov [#allocation3]  }
  0x35   :  { %s795_s5 = sshll.u32 %s988_s4, 4  ;;  %s796_s5 = int_to_ptr.vmem [resolvable:$true] %s795_s5 }
  0x44   :  { %817 = vmatmul.msk.bf16.gmra.mxu0 %vm78_vm1, %v49_v26 }
  0x54   :  { %818 = vmatmul.msk.bf16.gmra.mxu0 %vm78_vm1, %v50_v33 }
  0x91   :  { %v116_v39 = vpop.f32.mrf.mxu0 }
  0x92   :  { %v117_v41 = vadd.f32 %v1124_v40, %v116_v39 }
  0x94   :  { %v156_v44 = vmax.f32 %v117_v41, 0.0 }
  0x97   :  { %v141_v6 = vpop.f32.mrf.mxu3 }
  0x98   :  { %v142_v16 = vadd.f32 %v1124_v40, %v141_v6 }
  0x99   :  { %v118_v42 = vpop.f32.mrf.mxu0 }
  0x9a   :  { %v119_v43 = vadd.f32 %v1124_v40, %v118_v42  ;;  %v166_v18 = vmax.f32 %v142_v16, 0.0 }
  0x9c   :  { %v157_v45 = vmax.f32 %v119_v43, 0.0 }
  0x9e   :  { %v172_v46 = vpack.c.bf16 %v157_v45, %v156_v44 }
  0x9f   :  { %v143_v11 = vpop.f32.mrf.mxu3 }
  0xa0   :  { %256 = vmatmul.bf16.vlgmr.msra.gmra.mxu1 %v172_v46  ;;  %v144_v17 = vadd.f32 %v1124_v40, %v143_v11 }
  0xa1   :  { %v121_v47 = vpop.f32.mrf.mxu0 }
  0xa2   :  { %v122_v48 = vadd.f32 %v1124_v40, %v121_v47  ;;  %v167_v19 = vmax.f32 %v144_v17, 0.0 }
  0xa4   :  { %v158_v51 = vmax.f32 %v122_v48, 0.0  ;;  %v177_v20 = vpack.c.bf16 %v167_v19, %v166_v18 }
  0xa7   :  { %v146_v15 = vpop.f32.mrf.mxu3 }
  0xa8   :  { %v147_v22 = vadd.f32 %v1124_v40, %v146_v15 }
  0xa9   :  { %v123_v49 = vpop.f32.mrf.mxu0 }
  0xaa   :  { %v124_v50 = vadd.f32 %v1124_v40, %v123_v49  ;;  %v168_v25 = vmax.f32 %v147_v22, 0.0 }
  0xac   :  { %v159_v52 = vmax.f32 %v124_v50, 0.0 }
  0xae   :  { %v173_v53 = vpack.c.bf16 %v159_v52, %v158_v51 }
  0xaf   :  { %v148_v21 = vpop.f32.mrf.mxu3 }
  0xb0   :  { %261 = vmatmul.bf16.gmra.mxu1 %v173_v53  ;;  %v149_v23 = vadd.f32 %v1124_v40, %v148_v21 }
  0xb1   :  { %v126_v54 = vpop.f32.mrf.mxu0 }
  0xb2   :  { %v127_v55 = vadd.f32 %v1124_v40, %v126_v54  ;;  %v169_v26 = vmax.f32 %v149_v23, 0.0 }
  0xb4   :  { %v160_v58 = vmax.f32 %v127_v55, 0.0  ;;  %v178_v27 = vpack.c.bf16 %v169_v26, %v168_v25 }
  0xb7   :  { %v151_v24 = vpop.f32.mrf.mxu3 }
  0xb8   :  { %v152_v29 = vadd.f32 %v1124_v40, %v151_v24 }
  0xb9   :  { %v128_v56 = vpop.f32.mrf.mxu0 }
  0xba   :  { %v129_v57 = vadd.f32 %v1124_v40, %v128_v56  ;;  %v170_v31 = vmax.f32 %v152_v29, 0.0 }
  0xbc   :  { %v161_v59 = vmax.f32 %v129_v57, 0.0 }
  0xbe   :  { %v174_v60 = vpack.c.bf16 %v161_v59, %v160_v58 }
  0xbf   :  { %v153_v28 = vpop.f32.mrf.mxu3 }
  0xc0   :  { %266 = vmatmul.bf16.gmra.mxu1 %v174_v60  ;;  %v154_v30 = vadd.f32 %v1124_v40, %v153_v28 }
  0xc1   :  { %v131_v61 = vpop.f32.mrf.mxu0 }
  0xc2   :  { %v132_v62 = vadd.f32 %v1124_v40, %v131_v61  ;;  %v171_v32 = vmax.f32 %v154_v30, 0.0 }
  0xc4   :  { %v162_v1 = vmax.f32 %v132_v62, 0.0  ;;  %v179_v33 = vpack.c.bf16 %v171_v32, %v170_v31 }
  0xc9   :  { %v133_v63 = vpop.f32.mrf.mxu0 }
  0xca   :  { %v134_v0 = vadd.f32 %v1124_v40, %v133_v63 }
  0xcc   :  { %v163_v2 = vmax.f32 %v134_v0, 0.0 }
  0xce   :  { %v175_v3 = vpack.c.bf16 %v163_v2, %v162_v1 }
  0xd0   :  { %271 = vmatmul.bf16.gmra.mxu1 %v175_v3 }
  0xd1   :  { %v136_v5 = vpop.f32.mrf.mxu0 }
  0xd2   :  { %v137_v8 = vadd.f32 %v1124_v40, %v136_v5 }
  0xd4   :  { %v164_v12 = vmax.f32 %v137_v8, 0.0 }
  0xd9   :  { %v138_v9 = vpop.f32.mrf.mxu0 }
  0xda   :  { %v139_v10 = vadd.f32 %v1124_v40, %v138_v9 }
  0xdc   :  { %v165_v13 = vmax.f32 %v139_v10, 0.0 }
  0xde   :  { %v176_v14 = vpack.c.bf16 %v165_v13, %v164_v12 }
  0xe0   :  { %276 = vmatmul.bf16.vlgmr.msra.gmra.mxu2 %v176_v14 }
  0xf0   :  { %281 = vmatmul.bf16.gmra.mxu2 %v177_v20 }
 0x100   :  { %286 = vmatmul.bf16.gmra.mxu2 %v178_v27 }
 0x110   :  { %291 = vmatmul.bf16.gmra.mxu2 %v179_v33 }
 0x11d   :  { %v257_v35 = vpop.f32.mrf.mxu1 }
 0x11e   :  { %v258_v36 = vadd.f32 %v1145_v34, %v257_v35 }
 0x120   :  { %v297_v38 = vmax.f32 %v258_v36, 0.0 }
 0x122   :  { %v317_v39 = vmul.f32 %v1151_v37, %v297_v38 }
 0x124   :  { %v334_v40 = vsel %vm333_vm2, %v317_v39, 0.0 }
 0x125   :  { %v259_v41 = vpop.f32.mrf.mxu1  ;;  %335 = vadd.xlane.f32.xlu0 %v334_v40 }
 0x126   :  { %v260_v42 = vadd.f32 %v1145_v34, %v259_v41 }
 0x128   :  { %v298_v43 = vmax.f32 %v260_v42, 0.0 }
 0x12a   :  { %v318_v44 = vmul.f32 %v1151_v37, %v298_v43 }
 0x12c   :  { %v337_v45 = vsel %vm333_vm2, %v318_v44, 0.0 }
 0x12d   :  { %v262_v46 = vpop.f32.mrf.mxu1  ;;  %338 = vadd.xlane.f32.xlu1 %v337_v45 }
 0x12e   :  { %v263_v47 = vadd.f32 %v1145_v34, %v262_v46 }
 0x130   :  { %v299_v48 = vmax.f32 %v263_v47, 0.0 }
 0x132   :  { %v319_v49 = vmul.f32 %v1151_v37, %v299_v48 }
 0x134   :  { %v340_v50 = vsel %vm333_vm2, %v319_v49, 0.0 }
 0x135   :  { %v264_v51 = vpop.f32.mrf.mxu1  ;;  %341 = vadd.xlane.f32.xlu1 %v340_v50 }
 0x136   :  { %v265_v52 = vadd.f32 %v1145_v34, %v264_v51 }
 0x138   :  { %v300_v53 = vmax.f32 %v265_v52, 0.0 }
 0x13a   :  { %v320_v54 = vmul.f32 %v1151_v37, %v300_v53 }
 0x13c   :  { %v343_v55 = vsel %vm333_vm2, %v320_v54, 0.0  ;;  %v386_v54 = vpop.permute.xlu0 %385 }
 0x13d   :  { %v267_v56 = vpop.f32.mrf.mxu1  ;;  %344 = vadd.xlane.f32.xlu2 %v343_v55 }
 0x13e   :  { %v268_v57 = vadd.f32 %v1145_v34, %v267_v56  ;;  %v1200_v56 = vperm.slane %v386_v54, 0 }
 0x140   :  { %v301_v58 = vmax.f32 %v268_v57, 0.0 }
 0x142   :  { %v321_v59 = vmul.f32 %v1151_v37, %v301_v58 }
 0x144   :  { %v346_v60 = vsel %vm333_vm2, %v321_v59, 0.0 }
 0x145   :  { %v269_v61 = vpop.f32.mrf.mxu1  ;;  %347 = vadd.xlane.f32.xlu2 %v346_v60 }
 0x146   :  { %v270_v62 = vadd.f32 %v1145_v34, %v269_v61 }
 0x148   :  { %v302_v63 = vmax.f32 %v270_v62, 0.0 }
 0x14a   :  { %v322_v0 = vmul.f32 %v1151_v37, %v302_v63 }
 0x14c   :  { %v349_v1 = vsel %vm333_vm2, %v322_v0, 0.0 }
 0x14d   :  { %v272_v2 = vpop.f32.mrf.mxu1  ;;  %350 = vadd.xlane.f32.xlu1 %v349_v1 }
 0x14e   :  { %v273_v3 = vadd.f32 %v1145_v34, %v272_v2 }
 0x150   :  { %v303_v4 = vmax.f32 %v273_v3, 0.0 }
 0x152   :  { %v323_v5 = vmul.f32 %v1151_v37, %v303_v4 }
 0x154   :  { %v352_v6 = vsel %vm333_vm2, %v323_v5, 0.0 }
 0x155   :  { %v274_v7 = vpop.f32.mrf.mxu1  ;;  %353 = vadd.xlane.f32.xlu2 %v352_v6 }
 0x156   :  { %v275_v8 = vadd.f32 %v1145_v34, %v274_v7 }
 0x158   :  { %v304_v9 = vmax.f32 %v275_v8, 0.0 }
 0x15a   :  { %v324_v10 = vmul.f32 %v1151_v37, %v304_v9 }
 0x15c   :  { %v355_v11 = vsel %vm333_vm2, %v324_v10, 0.0 }
 0x15d   :  { %356 = vadd.xlane.f32.xlu1 %v355_v11 }
 0x163   :  { %v277_v12 = vpop.f32.mrf.mxu2 }
 0x164   :  { %v278_v13 = vadd.f32 %v1145_v34, %v277_v12 }
 0x166   :  { %v305_v14 = vmax.f32 %v278_v13, 0.0 }
 0x168   :  { %v325_v15 = vmul.f32 %v1151_v37, %v305_v14 }
 0x16a   :  { %v358_v16 = vsel %vm333_vm2, %v325_v15, 0.0 }
 0x16b   :  { %v279_v17 = vpop.f32.mrf.mxu2  ;;  %359 = vadd.xlane.f32.xlu2 %v358_v16 }
 0x16c   :  { %v280_v18 = vadd.f32 %v1145_v34, %v279_v17 }
 0x16e   :  { %v306_v19 = vmax.f32 %v280_v18, 0.0 }
 0x170   :  { %v326_v20 = vmul.f32 %v1151_v37, %v306_v19 }
 0x172   :  { %v361_v21 = vsel %vm333_vm2, %v326_v20, 0.0 }
 0x173   :  { %v282_v22 = vpop.f32.mrf.mxu2  ;;  %362 = vadd.xlane.f32.xlu1 %v361_v21 }
 0x174   :  { %v283_v23 = vadd.f32 %v1145_v34, %v282_v22 }
 0x176   :  { %v307_v24 = vmax.f32 %v283_v23, 0.0 }
 0x178   :  { %v327_v25 = vmul.f32 %v1151_v37, %v307_v24 }
 0x17a   :  { %v364_v26 = vsel %vm333_vm2, %v327_v25, 0.0 }
 0x17b   :  { %v284_v27 = vpop.f32.mrf.mxu2  ;;  %365 = vadd.xlane.f32.xlu2 %v364_v26 }
 0x17c   :  { %v285_v28 = vadd.f32 %v1145_v34, %v284_v27  ;;  %v725_v27 = vlaneseq }
 0x17e   :  { %v308_v29 = vmax.f32 %v285_v28, 0.0 }
 0x180   :  { %v328_v30 = vmul.f32 %v1151_v37, %v308_v29 }
 0x182   :  { %v367_v31 = vsel %vm333_vm2, %v328_v30, 0.0 }
 0x183   :  { %v287_v32 = vpop.f32.mrf.mxu2  ;;  %368 = vadd.xlane.f32.xlu1 %v367_v31 }
 0x184   :  { %v288_v33 = vadd.f32 %v1145_v34, %v287_v32 }
 0x186   :  { %v309_v35 = vmax.f32 %v288_v33, 0.0 }
 0x188   :  { %v329_v36 = vmul.f32 %v1151_v37, %v309_v35 }
 0x18a   :  { %v370_v38 = vsel %vm333_vm2, %v329_v36, 0.0  ;;  %v1235_v36 = vand.u32 127, %v725_v27 }
 0x18b   :  { %v289_v39 = vpop.f32.mrf.mxu2  ;;  %371 = vadd.xlane.f32.xlu2 %v370_v38 }
 0x18c   :  { %v290_v40 = vadd.f32 %v1145_v34, %v289_v39 }
 0x18e   :  { %v310_v41 = vmax.f32 %v290_v40, 0.0 }
 0x190   :  { %v330_v42 = vmul.f32 %v1151_v37, %v310_v41 }
 0x192   :  { %v373_v43 = vsel %vm333_vm2, %v330_v42, 0.0 }
 0x193   :  { %v292_v44 = vpop.f32.mrf.mxu2  ;;  %374 = vadd.xlane.f32.xlu1 %v373_v43 }
 0x194   :  { %v293_v45 = vadd.f32 %v1145_v34, %v292_v44 }
 0x196   :  { %v311_v46 = vmax.f32 %v293_v45, 0.0 }
 0x198   :  { %v331_v47 = vmul.f32 %v1151_v37, %v311_v46  ;;  %v336_v57 = vpop.xlane.xlu0 %335 }
 0x199   :  { %v389_v58 = vadd.f32 %v1200_v56, %v336_v57 }
 0x19a   :  { %v376_v48 = vsel %vm333_vm2, %v331_v47, 0.0 }
 0x19b   :  { %v294_v49 = vpop.f32.mrf.mxu2  ;;  %377 = vadd.xlane.f32.xlu2 %v376_v48  ;;  %v854_v61 = vmul.f32 -1.442695, %v389_v58  ;;  %v1247_v48 = vadd.s32 4294967288, %v1235_v36 }
 0x19c   :  { %v295_v50 = vadd.f32 %v1145_v34, %v294_v49 }
 0x19d   :  { %897 = vpow2.f32 %v854_v61  ;;  %v1269_v61 = vadd.s32 4294967280, %v1235_v36 }
 0x19e   :  { %v312_v51 = vmax.f32 %v295_v50, 0.0 }
 0x1a0   :  { %v332_v52 = vmul.f32 %v1151_v37, %v312_v51  ;;  %v339_v55 = vpop.xlane.xlu1 %338 }
 0x1a1   :  { %v390_v59 = vadd.f32 %v1200_v56, %v339_v55 }
 0x1a2   :  { %v379_v53 = vsel %vm333_vm2, %v332_v52, 0.0 }
 0x1a3   :  { %380 = vadd.xlane.f32.xlu0 %v379_v53  ;;  %v855_v63 = vmul.f32 -1.442695, %v390_v59  ;;  %v898_v0 = vpop.eup %897 }
 0x1a4   :  { %v1206_v4 = vadd.f32 1.0, %v898_v0 }
 0x1a5   :  { %899 = vpow2.f32 %v855_v63 }
 0x1a6   :  { %v478_v47 = vand.u32 2147483647, %v1206_v4  ;;  %v480_v49 = vand.u32 2147483648, %v1206_v4  ;;  %vm474_vm5 = vweird.f32 %v1206_v4 }
 0x1a8   :  { %v342_v60 = vpop.xlane.xlu1 %341  ;;  %vm1263_vm6 = vcmp.eq.f32.partialorder %v478_v47, 8.507059e+37 }
 0x1a9   :  { %v391_v34 = vadd.f32 %v1200_v56, %v342_v60 }
 0x1ab   :  { %v856_v37 = vmul.f32 -1.442695, %v391_v34  ;;  %v900_v3 = vpop.eup %899 }
 0x1ac   :  { %v1208_v7 = vadd.f32 1.0, %v900_v3 }
 0x1ad   :  { %901 = vpow2.f32 %v856_v37 }
 0x1ae   :  { %903 = vrcp.f32 %v1206_v4  ;;  %v495_v60 = vand.u32 2147483648, %v1208_v7  ;;  %vm489_vm8 = vweird.f32 %v1208_v7  ;;  %v493_v34 = vand.u32 2147483647, %v1208_v7 }
 0x1b0   :  { %v345_v62 = vpop.xlane.xlu2 %344  ;;  %vm494_vm13 = vcmp.eq.f32.partialorder %v493_v34, 8.507059e+37 }
 0x1b1   :  { %v392_v1 = vadd.f32 %v1200_v56, %v345_v62 }
 0x1b3   :  { %v857_v5 = vmul.f32 -1.442695, %v392_v1  ;;  %v902_v6 = vpop.eup %901 }
 0x1b4   :  { %v1212_v10 = vadd.f32 1.0, %v902_v6  ;;  %v1218_v16 = vpop.eup %903 }
 0x1b5   :  { %905 = vpow2.f32 %v857_v5  ;;  %v470_v21 = vmul.f32 %v1218_v16, %v1206_v4  ;;  %vm475_vm3 = vweird.f32 %v1218_v16  ;;  %v481_v4 = vor.u32 1.1754944e-38, %v480_v49 }
 0x1b6   :  { %907 = vrcp.f32 %v1208_v7  ;;  %vm1271_vm7 = vmor %vm474_vm5, %vm475_vm3  ;;  %vm504_vm12 = vweird.f32 %v1212_v10 }
 0x1b7   :  { %909 = vrcp.f32 %v1212_v10  ;;  %v471_v29 = vsub.f32 1.0, %v470_v21 }
 0x1b8   :  { %v348_v2 = vpop.xlane.xlu2 %347 }
 0x1b9   :  { %v393_v9 = vadd.f32 %v1200_v56, %v348_v2  ;;  %v472_v40 = vmul.f32 %v1218_v16, %v471_v29 }
 0x1bb   :  { %v858_v13 = vmul.f32 -1.442695, %v393_v9  ;;  %v906_v17 = vpop.eup %905  ;;  %v473_v52 = vadd.f32 %v1218_v16, %v472_v40  ;;  %v496_v9 = vor.u32 1.1754944e-38, %v495_v60 }
 0x1bc   :  { %v1220_v19 = vpop.eup %907  ;;  %v1224_v22 = vadd.f32 1.0, %v906_v17  ;;  %v508_v17 = vand.u32 2147483647, %v1212_v10 }
 0x1bd   :  { %911 = vpow2.f32 %v858_v13  ;;  %v1227_v24 = vpop.eup %909  ;;  %v485_v25 = vmul.f32 %v1220_v19, %v1208_v7  ;;  %vm490_vm4 = vweird.f32 %v1220_v19  ;;  %v477_v37 = vsel %vm1271_vm7, %v1218_v16, %v473_v52 }
 0x1be   :  { %v500_v30 = vmul.f32 %v1227_v24, %v1212_v10  ;;  %vm1283_vm10 = vmor %vm489_vm8, %vm490_vm4  ;;  %vm505_vm11 = vweird.f32 %v1227_v24  ;;  %vm509_vm0 = vcmp.eq.f32.partialorder %v508_v17, 8.507059e+37  ;;  %vm519_vm2 = vweird.f32 %v1224_v22 }
 0x1bf   :  { %v486_v33 = vsub.f32 1.0, %v485_v25  ;;  %vm1308_vm14 = vmor %vm504_vm12, %vm505_vm11  ;;  %vm738_vm7 = vcmask 261312  }
 0x1c0   :  { %v351_v8 = vpop.xlane.xlu1 %350  ;;  %v501_v41 = vsub.f32 1.0, %v500_v30 }
 0x1c1   :  { %v394_v11 = vadd.f32 %v1200_v56, %v351_v8  ;;  %v487_v44 = vmul.f32 %v1220_v19, %v486_v33 }
 0x1c2   :  { %v502_v53 = vmul.f32 %v1227_v24, %v501_v41 }
 0x1c3   :  { %v859_v15 = vmul.f32 -1.442695, %v394_v11  ;;  %v912_v28 = vpop.eup %911  ;;  %v488_v54 = vadd.f32 %v1220_v19, %v487_v44  ;;  %v510_v11 = vand.u32 2147483648, %v1212_v10 }
 0x1c4   :  { %v1237_v38 = vadd.f32 1.0, %v912_v28  ;;  %v503_v1 = vadd.f32 %v1227_v24, %v502_v53 }
 0x1c5   :  { %913 = vpow2.f32 %v859_v15  ;;  %v492_v5 = vsel %vm1283_vm10, %v1220_v19, %v488_v54  ;;  %v482_v15 = vsel %vm1263_vm6, %v481_v4, %v477_v37  ;;  %v511_v28 = vor.u32 1.1754944e-38, %v510_v11 }
 0x1c6   :  { %v507_v19 = vsel %vm1308_vm14, %v1227_v24, %v503_v1  ;;  %v727_v27 = vperm.slane %v482_v15, %v1235_v36  ;;  %v538_v54 = vand.u32 2147483647, %v1237_v38  ;;  %vm534_vm5 = vweird.f32 %v1237_v38 }
 0x1c7   :  { %v512_v33 = vsel %vm509_vm0, %v511_v28, %v507_v19  ;;  %v1367_v37 = vadd.s32 4294967248, %v1235_v36  ;;  %vm746_vm0 = vcmask 392512  }
 0x1c8   :  { %v354_v12 = vpop.xlane.xlu2 %353  ;;  %v733_v52 = vperm.slane %v512_v33, %v1269_v61  ;;  %vm1374_vm6 = vcmp.eq.f32.partialorder %v538_v54, 8.507059e+37 }
 0x1c9   :  { %v395_v14 = vadd.f32 %v1200_v56, %v354_v12  ;;  %v1302_v12 = vadd.s32 4294967272, %v1235_v36 }
 0x1cb   :  { %v860_v20 = vmul.f32 -1.442695, %v395_v14  ;;  %v914_v32 = vpop.eup %913 }
 0x1cc   :  { %v1240_v42 = vadd.f32 1.0, %v914_v32  ;;  %v1334_v32 = vadd.s32 4294967256, %v1235_v36 }
 0x1cd   :  { %915 = vpow2.f32 %v860_v20  ;;  %v1317_v20 = vadd.s32 4294967264, %v1235_v36 }
 0x1ce   :  { %917 = vrcp.f32 %v1224_v22 }
 0x1d0   :  { %v357_v18 = vpop.xlane.xlu1 %356 }
 0x1d1   :  { %v396_v23 = vadd.f32 %v1200_v56, %v357_v18  ;;  %v497_v18 = vsel %vm494_vm13, %v496_v9, %v492_v5  ;;  %vm742_vm13 = vcmask 326912  }
 0x1d2   :  { %v729_v30 = vperm.slane %v497_v18, %v1247_v48 }
 0x1d3   :  { %v861_v31 = vmul.f32 -1.442695, %v396_v23  ;;  %v916_v39 = vpop.eup %915 }
 0x1d4   :  { %v1243_v46 = vpop.eup %917  ;;  %v1251_v50 = vadd.f32 1.0, %v916_v39 }
 0x1d5   :  { %919 = vpow2.f32 %v861_v31  ;;  %v515_v55 = vmul.f32 %v1243_v46, %v1224_v22  ;;  %v523_v31 = vand.u32 2147483647, %v1224_v22  ;;  %vm520_vm1 = vweird.f32 %v1243_v46 }
 0x1d6   :  { %921 = vrcp.f32 %v1237_v38  ;;  %vm1353_vm4 = vmor %vm519_vm2, %vm520_vm1  ;;  %v568_v28 = vand.u32 2147483647, %v1251_v50 }
 0x1d7   :  { %923 = vrcp.f32 %v1240_v42  ;;  %v516_v6 = vsub.f32 1.0, %v515_v55  ;;  %vm1348_vm3 = vcmp.eq.f32.partialorder %v523_v31, 8.507059e+37  ;;  %v570_v31 = vand.u32 2147483648, %v1251_v50 }
 0x1d9   :  { %v517_v25 = vmul.f32 %v1243_v46, %v516_v6 }
 0x1db   :  { %v920_v58 = vpop.eup %919  ;;  %v518_v41 = vadd.f32 %v1243_v46, %v517_v25  ;;  %v555_v25 = vand.u32 2147483648, %v1240_v42 }
 0x1dc   :  { %v1290_v3 = vpop.eup %921  ;;  %v1295_v7 = vadd.f32 1.0, %v920_v58 }
 0x1dd   :  { %v1297_v8 = vpop.eup %923  ;;  %v522_v60 = vsel %vm1353_vm4, %v1243_v46, %v518_v41  ;;  %vm535_vm8 = vweird.f32 %v1290_v3  ;;  %vm750_vm4 = vcmask 458112  }
 0x1de   :  { %v360_v26 = vpop.xlane.xlu2 %359  ;;  %v545_v24 = vmul.f32 %v1297_v8, %v1240_v42  ;;  %vm550_vm10 = vweird.f32 %v1297_v8  ;;  %vm1402_vm11 = vmor %vm534_vm5, %vm535_vm8 }
 0x1df   :  { %v397_v35 = vadd.f32 %v1200_v56, %v360_v26  ;;  %v530_v26 = vmul.f32 %v1290_v3, %v1237_v38 }
 0x1e0   :  { %v546_v47 = vsub.f32 1.0, %v545_v24 }
 0x1e1   :  { %v862_v45 = vmul.f32 -1.442695, %v397_v35  ;;  %v525_v35 = vand.u32 2147483648, %v1224_v22  ;;  %v540_v22 = vand.u32 2147483648, %v1237_v38 }
 0x1e3   :  { %925 = vpow2.f32 %v862_v45  ;;  %v526_v61 = vor.u32 1.1754944e-38, %v525_v35  ;;  %v541_v6 = vor.u32 1.1754944e-38, %v540_v22 }
 0x1e4   :  { %927 = vrcp.f32 %v1251_v50 }
 0x1e5   :  { %v527_v5 = vsel %vm1348_vm3, %v526_v61, %v522_v60  ;;  %vm569_vm3 = vcmp.eq.f32.partialorder %v568_v28, 8.507059e+37  ;;  %v583_v61 = vand.u32 2147483647, %v1295_v7 }
 0x1e6   :  { %v363_v43 = vpop.xlane.xlu1 %362  ;;  %v737_v19 = vperm.slane %v527_v5, %v1302_v12 }
 0x1e7   :  { %v398_v51 = vadd.f32 %v1200_v56, %v363_v43  ;;  %v531_v43 = vsub.f32 1.0, %v530_v26 }
 0x1e9   :  { %v863_v63 = vmul.f32 -1.442695, %v398_v51  ;;  %v926_v14 = vpop.eup %925  ;;  %v731_v51 = vsel %vm730_vm9, %v729_v30, %v727_v27  ;;  %v532_v62 = vmul.f32 %v1290_v3, %v531_v43  ;;  %vm549_vm9 = vweird.f32 %v1240_v42 }
 0x1ea   :  { %v1319_v23 = vpop.eup %927  ;;  %v1329_v29 = vadd.f32 1.0, %v926_v14  ;;  %v1372_v1 = vsel %vm734_vm15, %v733_v52, %v731_v51  ;;  %vm1416_vm14 = vmor %vm549_vm9, %vm550_vm10  ;;  %vm564_vm15 = vweird.f32 %v1251_v50  ;;  %vm584_vm9 = vcmp.eq.f32.partialorder %v583_v61, 8.507059e+37 }
 0x1eb   :  { %929 = vpow2.f32 %v863_v63  ;;  %v560_v39 = vmul.f32 %v1319_v23, %v1251_v50  ;;  %v547_v63 = vmul.f32 %v1297_v8, %v546_v47  ;;  %v533_v11 = vadd.f32 %v1290_v3, %v532_v62 }
 0x1ec   :  { %931 = vrcp.f32 %v1295_v7  ;;  %vm565_vm12 = vweird.f32 %v1319_v23  ;;  %v571_v47 = vor.u32 1.1754944e-38, %v570_v31  ;;  %v739_v55 = vsel %vm738_vm7, %v737_v19, %v1372_v1 }
 0x1ed   :  { %v548_v15 = vadd.f32 %v1297_v8, %v547_v63  ;;  %v537_v30 = vsel %vm1402_vm11, %v1290_v3, %v533_v11  ;;  %vm1433_vm2 = vmor %vm564_vm15, %vm565_vm12  ;;  %v600_v11 = vand.u32 2147483648, %v1329_v29  ;;  %vm754_vm10 = vcmask 523712  }
 0x1ee   :  { %v366_v57 = vpop.xlane.xlu2 %365  ;;  %vm594_vm11 = vweird.f32 %v1329_v29 }
 0x1ef   :  { %v399_v2 = vadd.f32 %v1200_v56, %v366_v57  ;;  %v561_v57 = vsub.f32 1.0, %v560_v39  ;;  %v552_v3 = vsel %vm1416_vm14, %v1297_v8, %v548_v15  ;;  %v542_v8 = vsel %vm1374_vm6, %v541_v6, %v537_v30 }
 0x1f0   :  { %v741_v22 = vperm.slane %v542_v8, %v1317_v20  ;;  %vm579_vm6 = vweird.f32 %v1295_v7  ;;  %v598_v6 = vand.u32 2147483647, %v1329_v29 }
 0x1f1   :  { %v864_v21 = vmul.f32 -1.442695, %v399_v2  ;;  %v930_v40 = vpop.eup %929  ;;  %v1379_v2 = vadd.s32 4294967240, %v1235_v36  ;;  %v562_v9 = vmul.f32 %v1319_v23, %v561_v57 }
 0x1f2   :  { %v1344_v49 = vpop.eup %931  ;;  %v1358_v58 = vadd.f32 1.0, %v930_v40  ;;  %v1438_v40 = vadd.s32 4294967232, %v1235_v36  ;;  %vm599_vm14 = vcmp.eq.f32.partialorder %v598_v6, 8.507059e+37 }
 0x1f3   :  { %933 = vpow2.f32 %v864_v21  ;;  %v575_v0 = vmul.f32 %v1344_v49, %v1295_v7  ;;  %v553_v21 = vand.u32 2147483647, %v1240_v42  ;;  %v563_v27 = vadd.f32 %v1319_v23, %v562_v9 }
 0x1f4   :  { %935 = vrcp.f32 %v1329_v29  ;;  %v556_v42 = vor.u32 1.1754944e-38, %v555_v25  ;;  %vm580_vm5 = vweird.f32 %v1344_v49 }
 0x1f5   :  { %v576_v16 = vsub.f32 1.0, %v575_v0  ;;  %vm554_vm1 = vcmp.eq.f32.partialorder %v553_v21, 8.507059e+37  ;;  %v567_v43 = vsel %vm1433_vm2, %v1319_v23, %v563_v27  ;;  %vm1464_vm8 = vmor %vm579_vm6, %vm580_vm5 }
 0x1f6   :  { %v369_v13 = vpop.xlane.xlu1 %368  ;;  %v572_v57 = vsel %vm569_vm3, %v571_v47, %v567_v43  ;;  %v1531_v47 = vadd.s32 4294967208, %v1235_v36 }
 0x1f7   :  { %v400_v10 = vadd.f32 %v1200_v56, %v369_v13  ;;  %v577_v35 = vmul.f32 %v1344_v49, %v576_v16  ;;  %v749_v46 = vperm.slane %v572_v57, %v1367_v37  ;;  %v743_v37 = vsel %vm742_vm13, %v741_v22, %v739_v55 }
 0x1f8   :  { %vm758_vm13 = vcmask 589312  }
 0x1f9   :  { %v865_v44 = vmul.f32 -1.442695, %v400_v10  ;;  %v934_v34 = vpop.eup %933  ;;  %v578_v53 = vadd.f32 %v1344_v49, %v577_v35 }
 0x1fa   :  { %v1381_v4 = vpop.eup %935  ;;  %v1390_v13 = vadd.f32 1.0, %v934_v34 }
 0x1fb   :  { %937 = vpow2.f32 %v865_v44  ;;  %v590_v26 = vmul.f32 %v1381_v4, %v1329_v29  ;;  %v582_v5 = vsel %vm1464_vm8, %v1344_v49, %v578_v53  ;;  %vm595_vm7 = vweird.f32 %v1381_v4 }
 0x1fc   :  { %vm1494_vm12 = vmor %vm594_vm11, %vm595_vm7  ;;  %v628_v8 = vand.u32 2147483647, %v1390_v13 }
 0x1fd   :  { %v591_v41 = vsub.f32 1.0, %v590_v26 }
 0x1fe   :  { %v372_v45 = vpop.xlane.xlu2 %371  ;;  %vm1547_vm5 = vcmp.eq.f32.partialorder %v628_v8, 8.507059e+37 }
 0x1ff   :  { %v401_v48 = vadd.f32 %v1200_v56, %v372_v45  ;;  %v557_v45 = vsel %vm554_vm1, %v556_v42, %v552_v3  ;;  %v613_v42 = vand.u32 2147483647, %v1358_v58 }
 0x200   :  { %v745_v34 = vperm.slane %v557_v45, %v1334_v32  ;;  %v1528_v45 = vadd.s32 4294967216, %v1235_v36 }
 0x201   :  { %v866_v59 = vmul.f32 -1.442695, %v401_v48  ;;  %v938_v18 = vpop.eup %937  ;;  %v585_v48 = vand.u32 2147483648, %v1295_v7  ;;  %vm614_vm3 = vcmp.eq.f32.partialorder %v613_v42, 8.507059e+37 }
 0x202   :  { %v1429_v39 = vadd.f32 1.0, %v938_v18  ;;  %v747_v18 = vsel %vm746_vm0, %v745_v34, %v743_v37  ;;  %vm609_vm0 = vweird.f32 %v1358_v58 }
 0x203   :  { %939 = vpow2.f32 %v866_v59  ;;  %v592_v59 = vmul.f32 %v1381_v4, %v591_v41  ;;  %v586_v0 = vor.u32 1.1754944e-38, %v585_v48  ;;  %v751_v10 = vsel %vm750_vm4, %v749_v46, %v747_v18 }
 0x204   :  { %941 = vrcp.f32 %v1358_v58  ;;  %vm624_vm4 = vweird.f32 %v1390_v13  ;;  %v645_v61 = vand.u32 2147483648, %v1429_v39  ;;  %vm639_vm8 = vweird.f32 %v1429_v39 }
 0x205   :  { %943 = vrcp.f32 %v1390_v13  ;;  %v593_v32 = vadd.f32 %v1381_v4, %v592_v59  ;;  %v587_v49 = vsel %vm584_vm9, %v586_v0, %v582_v5 }
 0x206   :  { %v375_v14 = vpop.xlane.xlu1 %374  ;;  %v753_v28 = vperm.slane %v587_v49, %v1379_v2  ;;  %v1580_v49 = vadd.s32 4294967192, %v1235_v36 }
 0x207   :  { %v402_v17 = vadd.f32 %v1200_v56, %v375_v14  ;;  %v1486_v14 = vadd.s32 4294967224, %v1235_v36  ;;  %v597_v29 = vsel %vm1494_vm12, %v1381_v4, %v593_v32 }
 0x208   :  { %v755_v43 = vsel %vm754_vm10, %v753_v28, %v751_v10  ;;  %vm762_vm10 = vcmask 654912  }
 0x209   :  { %v867_v12 = vmul.f32 -1.442695, %v402_v17  ;;  %v940_v24 = vpop.eup %939 }
 0x20a   :  { %v1423_v33 = vpop.eup %941  ;;  %v1445_v44 = vadd.f32 1.0, %v940_v24  ;;  %v615_v24 = vand.u32 2147483648, %v1358_v58 }
 0x20b   :  { %945 = vpow2.f32 %v867_v12  ;;  %v605_v51 = vmul.f32 %v1423_v33, %v1358_v58  ;;  %v1454_v54 = vpop.eup %943  ;;  %v601_v12 = vor.u32 1.1754944e-38, %v600_v11  ;;  %vm610_vm15 = vweird.f32 %v1423_v33 }
 0x20c   :  { %947 = vrcp.f32 %v1429_v39  ;;  %v620_v7 = vmul.f32 %v1454_v54, %v1390_v13  ;;  %vm1521_vm1 = vmor %vm609_vm0, %vm610_vm15  ;;  %v616_v53 = vor.u32 1.1754944e-38, %v615_v24  ;;  %vm625_vm2 = vweird.f32 %v1454_v54 }
 0x20d   :  { %949 = vrcp.f32 %v1445_v44  ;;  %v606_v1 = vsub.f32 1.0, %v605_v51  ;;  %v602_v3 = vsel %vm599_vm14, %v601_v12, %v597_v29  ;;  %v630_v51 = vand.u32 2147483648, %v1390_v13  ;;  %vm1555_vm6 = vmor %vm624_vm4, %vm625_vm2 }
 0x20e   :  { %v378_v52 = vpop.xlane.xlu2 %377  ;;  %v621_v21 = vsub.f32 1.0, %v620_v7  ;;  %v757_v48 = vperm.slane %v602_v3, %v1438_v40  ;;  %v1543_v40 = vadd.s32 4294967200, %v1235_v36  ;;  %vm654_vm11 = vweird.f32 %v1445_v44 }
 0x20f   :  { %v403_v23 = vadd.f32 %v1200_v56, %v378_v52  ;;  %v607_v15 = vmul.f32 %v1423_v33, %v606_v1  ;;  %v631_v34 = vor.u32 1.1754944e-38, %v630_v51  ;;  %v660_v18 = vand.u32 2147483648, %v1445_v44 }
 0x210   :  { %v622_v35 = vmul.f32 %v1454_v54, %v621_v21  ;;  %v759_v1 = vsel %vm758_vm13, %v757_v48, %v755_v43  ;;  %vm766_vm15 = vcmask 720512   ;;  %v658_v29 = vand.u32 2147483647, %v1445_v44 }
 0x211   :  { %v946_v60 = vpop.eup %945  ;;  %v868_v62 = vmul.f32 -1.442695, %v403_v23 }
 0x212   :  { %v1468_v20 = vadd.f32 1.0, %v946_v60  ;;  %v1480_v9 = vpop.eup %947  ;;  %v623_v23 = vadd.f32 %v1454_v54, %v622_v35  ;;  %v643_v60 = vand.u32 2147483647, %v1429_v39 }
 0x213   :  { %951 = vpow2.f32 %v868_v62  ;;  %v1489_v17 = vpop.eup %949  ;;  %v635_v26 = vmul.f32 %v1480_v9, %v1429_v39  ;;  %vm640_vm7 = vweird.f32 %v1480_v9 }
 0x214   :  { %953 = vrcp.f32 %v1468_v20  ;;  %v650_v4 = vmul.f32 %v1489_v17, %v1445_v44  ;;  %v627_v46 = vsel %vm1555_vm6, %v1454_v54, %v623_v23  ;;  %vm1575_vm9 = vcmp.eq.f32.partialorder %v643_v60, 8.507059e+37  ;;  %vm1589_vm13 = vmor %vm639_vm8, %vm640_vm7 }
 0x215   :  { %v636_v50 = vsub.f32 1.0, %v635_v26  ;;  %v646_v54 = vor.u32 1.1754944e-38, %v645_v61  ;;  %vm655_vm12 = vweird.f32 %v1489_v17  ;;  %v675_v39 = vand.u32 2147483648, %v1468_v20 }
 0x216   :  { %v381_v16 = vpop.xlane.xlu0 %380  ;;  %v651_v52 = vsub.f32 1.0, %v650_v4  ;;  %vm669_vm2 = vweird.f32 %v1468_v20  ;;  %v673_v10 = vand.u32 2147483647, %v1468_v20  ;;  %vm659_vm6 = vcmp.eq.f32.partialorder %v658_v29, 8.507059e+37 }
 0x217   :  { %v404_v25 = vadd.f32 %v1200_v56, %v381_v16  ;;  %v608_v56 = vadd.f32 %v1423_v33, %v607_v15  ;;  %v637_v22 = vmul.f32 %v1480_v9, %v636_v50  ;;  %v632_v15 = vsel %vm1547_vm5, %v631_v34, %v627_v46 }
 0x218   :  { %v652_v63 = vmul.f32 %v1489_v17, %v651_v52  ;;  %v676_v35 = vor.u32 1.1754944e-38, %v675_v39  ;;  %vm674_vm8 = vcmp.eq.f32.partialorder %v673_v10, 8.507059e+37  ;;  %v784_v23 = vadd.s32 4294967176, %v1235_v36 }
 0x219   :  { %v952_v27 = vpop.eup %951  ;;  %v869_v30 = vmul.f32 -1.442695, %v404_v25  ;;  %v612_v58 = vsel %vm1521_vm1, %v1423_v33, %v608_v56  ;;  %v638_v6 = vadd.f32 %v1480_v9, %v637_v22  ;;  %vm1603_vm1 = vmor %vm654_vm11, %vm655_vm12  ;;  %vm770_vm11 = vcmask 786112  }
 0x21a   :  { %v1507_v38 = vpop.eup %953  ;;  %v1513_v31 = vadd.f32 1.0, %v952_v27  ;;  %v1545_v59 = vsel %vm614_vm3, %v616_v53, %v612_v58  ;;  %vm774_vm12 = vcmask 851712  }
 0x21b   :  { %v665_v2 = vmul.f32 %v1507_v38, %v1468_v20  ;;  %955 = vpow2.f32 %v869_v30  ;;  %v761_v32 = vperm.slane %v1545_v59, %v1486_v14  ;;  %v653_v14 = vadd.f32 %v1489_v17, %v652_v63 }
 0x21c   :  { %957 = vrcp.f32 %v1513_v31  ;;  %vm670_vm14 = vweird.f32 %v1507_v38  ;;  %v642_v25 = vsel %vm1589_vm13, %v1480_v9, %v638_v6  ;;  %v690_v27 = vand.u32 2147483648, %v1513_v31 }
 0x21d   :  { %v666_v55 = vsub.f32 1.0, %v665_v2  ;;  %vm1611_vm3 = vmor %vm669_vm2, %vm670_vm14  ;;  %vm684_vm4 = vweird.f32 %v1513_v31  ;;  %v657_v44 = vsel %vm1603_vm1, %v1489_v17, %v653_v14  ;;  %v688_v24 = vand.u32 2147483647, %v1513_v31 }
 0x21e   :  { %v765_v30 = vperm.slane %v632_v15, %v1528_v45  ;;  %v661_v20 = vor.u32 1.1754944e-38, %v660_v18  ;;  %v647_v4 = vsel %vm1575_vm9, %v646_v54, %v642_v25  ;;  %v691_v50 = vor.u32 1.1754944e-38, %v690_v27 }
 0x21f   :  { %v667_v5 = vmul.f32 %v1507_v38, %v666_v55  ;;  %vm689_vm7 = vcmp.eq.f32.partialorder %v688_v24, 8.507059e+37  ;;  %v769_v43 = vperm.slane %v647_v4, %v1531_v47  ;;  %v763_v58 = vsel %vm762_vm10, %v761_v32, %v759_v1 }
 0x220   :  { %v662_v42 = vsel %vm659_vm6, %v661_v20, %v657_v44  ;;  %v767_v55 = vsel %vm766_vm15, %v765_v30, %v763_v58  ;;  %vm782_vm10 = vcmask 982912   ;;  %vm786_vm2 = vcmask 1048512  }
 0x221   :  { %v956_v57 = vpop.eup %955  ;;  %v668_v19 = vadd.f32 %v1507_v38, %v667_v5  ;;  %v773_v51 = vperm.slane %v662_v42, %v1543_v40  ;;  %v771_v59 = vsel %vm770_vm11, %v769_v43, %v767_v55 }
 0x222   :  { %v1553_v62 = vpop.eup %957  ;;  %v1560_v0 = vadd.f32 1.0, %v956_v57 }
 0x223   :  { %v680_v7 = vmul.f32 %v1553_v62, %v1513_v31  ;;  %vm685_vm0 = vweird.f32 %v1553_v62  ;;  %v672_v3 = vsel %vm1611_vm3, %v1507_v38, %v668_v19  ;;  %v780_v31 = vadd.s32 4294967184, %v1235_v36 }
 0x224   :  { %959 = vrcp.f32 %v1560_v0  ;;  %vm686_vm5 = vmor %vm684_vm4, %vm685_vm0  ;;  %v677_v41 = vsel %vm674_vm8, %v676_v35, %v672_v3  ;;  %v705_v8 = vand.u32 2147483648, %v1560_v0  ;;  %v703_v48 = vand.u32 2147483647, %v1560_v0 }
 0x225   :  { %v681_v11 = vsub.f32 1.0, %v680_v7  ;;  %vm699_vm13 = vweird.f32 %v1560_v0  ;;  %v777_v53 = vperm.slane %v677_v41, %v1580_v49  ;;  %vm778_vm0 = vcmask 917312  }
 0x226   :  { %v706_v47 = vor.u32 1.1754944e-38, %v705_v8  ;;  %vm704_vm1 = vcmp.eq.f32.partialorder %v703_v48, 8.507059e+37  ;;  %v775_v33 = vsel %vm774_vm12, %v773_v51, %v771_v59 }
 0x227   :  { %v682_v21 = vmul.f32 %v1553_v62, %v681_v11  ;;  %v779_v36 = vsel %vm778_vm0, %v777_v53, %v775_v33 }
 0x229   :  { %v683_v28 = vadd.f32 %v1553_v62, %v682_v21 }
 0x22a   :  { %v960_v12 = vpop.eup %959 }
 0x22b   :  { %v695_v56 = vmul.f32 %v960_v12, %v1560_v0  ;;  %v687_v17 = vsel %vm686_vm5, %v1553_v62, %v683_v28  ;;  %vm700_vm9 = vweird.f32 %v960_v12 }
 0x22c   :  { %v692_v38 = vsel %vm689_vm7, %v691_v50, %v687_v17  ;;  %vm701_vm14 = vmor %vm699_vm13, %vm700_vm9 }
 0x22d   :  { %v696_v2 = vsub.f32 1.0, %v695_v56  ;;  %v781_v22 = vperm.slane %v692_v38, %v780_v31 }
 0x22f   :  { %v697_v45 = vmul.f32 %v960_v12, %v696_v2  ;;  %v783_v61 = vsel %vm782_vm10, %v781_v22, %v779_v36 }
 0x231   :  { %v698_v52 = vadd.f32 %v960_v12, %v697_v45 }
 0x233   :  { %v702_v57 = vsel %vm701_vm14, %v960_v12, %v698_v52 }
 0x234   :  { %v707_v40 = vsel %vm704_vm1, %v706_v47, %v702_v57 }
 0x235   :  { %v785_v60 = vperm.slane %v707_v40, %v784_v23 }
 0x237   :  { %v787_v62 = vsel %vm786_vm2, %v785_v60, %v783_v61 }
 0x238   :  { %789 = vst [vmem:[#allocation3] sm:$0x1] %v787_v62 }
 0x239   :  { %800 = dma.vmem_to_hbm [thread:$0]  %s796_s5, 16, %s798_s11, [#allocation4]  }
 0x23a   :  { %985 = dma.done.wait [#allocation4], 16  }
 0x23b   :  { %986 = vsyncadd [#allocation4], 4294967280 }
 0x23c   :  { %805 = vsyncpa [#allocation4], 1 }

</bundles_post_ra>
